<compile_context>
chip_gen: v6e
topology: v6e:2x2x1
jax: 0.10.0
libtpu: 0.0.40
codegen_flags: <defaults>
</compile_context>

<pallas_src>
import functools
import numpy as np
import jax
import jax.numpy as jnp
from jax.experimental import pallas as pl
from jax.experimental.pallas import tpu as pltpu

LANE = 128
MXU_M = 256          # v6e/v7x MXU is 256x256; 256-row alignment is 128-ok on v5e too
OUT_PAD = 128        # lane-dense final output store


def _round_up(x, m):
    return ((x + m - 1) // m) * m


def _vmem_specs(n):
    return [pl.BlockSpec(memory_space=pltpu.MemorySpace.VMEM) for _ in range(n)]


def _vmem_limit_bytes():
    # ~75% of physical VMEM (48 MiB on v7x's 64 MiB, ~96 MiB on v5e/v6e's 128 MiB).
    try:
        cap = int(pltpu.get_tpu_info().vmem_capacity_bytes)
        return int(min(cap * 3 // 4, 100 * 1024 * 1024))
    except Exception:
        return 48 * 1024 * 1024


# ------------------------------ kernels ------------------------------

def _edge_mlp_kernel(ef_ref, w1_ref, b1_ref, w2_ref, b2_ref, msg_ref):
    # EdgeAggregation message MLP: Linear -> ReLU -> Linear.
    # bf16 operands, f32 accumulation (MXU fast path).
    h1 = jnp.dot(ef_ref[...], w1_ref[...],
                 preferred_element_type=jnp.float32) + b1_ref[...]
    h1 = jnp.maximum(h1, 0.0).astype(jnp.bfloat16)
    msg_ref[...] = jnp.dot(h1, w2_ref[...],
                           preferred_element_type=jnp.float32) + b2_ref[...]


def _tagconv_stack_kernel(*refs, K, n_layers):
    # refs = (h0, P, w0, b0, w1, b1, ..., out)
    h0_ref, p_ref = refs[0], refs[1]
    out_ref = refs[-1]
    wb = refs[2:-1]

    p = p_ref[...]                        # (N_pad, N_pad) bf16, resident across all layers
    h = h0_ref[...]                       # (N_pad, H) f32

    for i in range(n_layers):
        w_ref = wb[2 * i]                 # (K+1, H, C_out_i) bf16
        b = wb[2 * i + 1][...]            # (1, C_out_i) f32
        # One bf16 copy per hop, reused for both the next P@h and the w_k matmul.
        hk = h.astype(jnp.bfloat16)
        acc = jnp.dot(hk, w_ref[0], preferred_element_type=jnp.float32)
        for k in range(1, K + 1):         # K small & static: unrolled
            hk = jnp.dot(p, hk,
                         preferred_element_type=jnp.float32).astype(jnp.bfloat16)
            acc = acc + jnp.dot(hk, w_ref[k], preferred_element_type=jnp.float32)
        h = acc + b
        if i < n_layers - 1:
            # TODO(synk): nn.Dropout(dropout_rate) is identity at rate 0 / eval;
            # stochastic masking (training, rate>0) not implemented.
            h = jnp.maximum(h, 0.0)
    out_ref[...] = h


# ------------------------------ host-side graph prep ------------------------------

def is_directed(edge_index):
    # mirrors MPN.is_directed: is there a reverse edge (col0 -> row0)?
    row0, col0 = edge_index[0, 0], edge_index[1, 0]
    cand = edge_index[1, edge_index[0, :] == col0]
    return not np.any(cand == row0)


def undirect_graph(edge_index, edge_attr):
    if is_directed(edge_index):
        rev = np.stack([edge_index[1, :], edge_index[0, :]], axis=0)
        edge_index = np.concatenate([edge_index, rev], axis=1)
        edge_attr = np.concatenate([edge_attr, edge_attr], axis=0)
    return edge_index, edge_attr


def build_norm_adj(edge_index, n_nodes):
    # gcn_norm without self-loops (TAGConv default normalize=True)
    row, col = edge_index
    deg = np.zeros(n_nodes, np.float32)
    np.add.at(deg, col, 1.0)
    dinv = np.where(deg > 0, deg ** -0.5, 0.0).astype(np.float32)
    norm = dinv[row] * dinv[col]
    P = np.zeros((n_nodes, n_nodes), np.float32)
    np.add.at(P, (col, row), norm)
    return P


def init_params(key, nf, ef, hidden, out_dim, n_layers, K):
    conv_dims = []
    if n_layers == 1:
        conv_dims.append((hidden, out_dim))
    else:
        conv_dims.append((hidden, hidden))
    for _ in range(n_layers - 2):
        conv_dims.append((hidden, hidden))
    if n_layers > 1:
        conv_dims.append((hidden, out_dim))

    keys = jax.random.split(key, 4 + 2 * len(conv_dims))
    p = {
        "ea_w1": 0.1 * jax.random.normal(keys[0], (2 * nf + ef, hidden), jnp.float32),
        "ea_b1": 0.1 * jax.random.normal(keys[1], (1, hidden), jnp.float32),
        "ea_w2": 0.1 * jax.random.normal(keys[2], (hidden, hidden), jnp.float32),
        "ea_b2": 0.1 * jax.random.normal(keys[3], (1, hidden), jnp.float32),
        "conv_w": [],
        "conv_b": [],
    }
    for i, (din, dout) in enumerate(conv_dims):
        p["conv_w"].append(
            0.1 * jax.random.normal(keys[4 + 2 * i], (K + 1, din, dout), jnp.float32))
        p["conv_b"].append(
            0.1 * jax.random.normal(keys[5 + 2 * i], (1, dout), jnp.float32))
    return p


# ------------------------------ forward ------------------------------

def mpn_forward(params, data_x, edge_index_np, edge_attr_np, *, nf, K, use_pallas=True):
    assert data_x.shape[-1] == nf * 2 + 4
    edge_index_np, edge_attr_np = undirect_graph(np.asarray(edge_index_np),
                                                 np.asarray(edge_attr_np))
    n_nodes = data_x.shape[0]
    P_np = build_norm_adj(edge_index_np, n_nodes)

    x = data_x[:, 4:4 + nf]
    row, col = edge_index_np
    x_i = x[jnp.asarray(col)]                      # target node features
    x_j = x[jnp.asarray(row)]                      # source node features
    edge_feat = jnp.concatenate([x_i, x_j, jnp.asarray(edge_attr_np)], axis=-1)

    n_layers = len(params["conv_w"])
    hidden = params["ea_w2"].shape[1]
    out_dim = params["conv_w"][-1].shape[-1]
    H = hidden

    # bf16 operands for all matmuls (f32 accumulate). Reference path applies the
    # same rounding, so the check validates the kernel, not bf16 itself.
    ef_bf = edge_feat.astype(jnp.bfloat16)
    w1 = jnp.asarray(params["ea_w1"]).astype(jnp.bfloat16)
    b1 = jnp.asarray(params["ea_b1"])
    w2 = jnp.asarray(params["ea_w2"]).astype(jnp.bfloat16)
    b2 = jnp.asarray(params["ea_b2"])
    P_bf = jnp.asarray(P_np).astype(jnp.bfloat16)
    col_j = jnp.asarray(col)

    if not use_pallas:
        # pure-JAX reference with the same bf16-operand / f32-accumulate scheme
        h1 = jnp.maximum(jnp.dot(ef_bf, w1, preferred_element_type=jnp.float32) + b1, 0.0)
        msg = jnp.dot(h1.astype(jnp.bfloat16), w2,
                      preferred_element_type=jnp.float32) + b2
        h = jax.ops.segment_sum(msg, col_j, num_segments=n_nodes)
        for i in range(n_layers):
            w = jnp.asarray(params["conv_w"][i]).astype(jnp.bfloat16)
            b = jnp.asarray(params["conv_b"][i])
            hk = h.astype(jnp.bfloat16)
            acc = jnp.dot(hk, w[0], preferred_element_type=jnp.float32)
            for k in range(1, K + 1):
                hk = jnp.dot(P_bf, hk,
                             preferred_element_type=jnp.float32).astype(jnp.bfloat16)
                acc = acc + jnp.dot(hk, w[k], preferred_element_type=jnp.float32)
            h = acc + b
            if i < n_layers - 1:
                h = jnp.maximum(h, 0.0)
        return h

    # ---------------------------- Pallas path ----------------------------
    E, F = edge_feat.shape
    E_pad = _round_up(E, LANE)
    N_pad = _round_up(n_nodes, MXU_M)
    vmem_limit = _vmem_limit_bytes()

    # ---- kernel 1: per-edge MLP (feature dims kept at natural width) ----
    ef_pad = jnp.pad(ef_bf, ((0, E_pad - E), (0, 0)))
    edge_ops = (ef_pad, w1, b1, w2, b2)
    e_flops = 2 * E_pad * F * H + 2 * E_pad * H * H
    e_bytes = sum(int(a.size) * a.dtype.itemsize for a in edge_ops) + E_pad * H * 4
    msg_pad = pl.pallas_call(
        _edge_mlp_kernel,
        out_shape=jax.ShapeDtypeStruct((E_pad, H), jnp.float32),
        in_specs=_vmem_specs(len(edge_ops)),
        out_specs=pl.BlockSpec(memory_space=pltpu.MemorySpace.VMEM),
        compiler_params=pltpu.CompilerParams(vmem_limit_bytes=vmem_limit),
        cost_estimate=pl.CostEstimate(flops=int(e_flops), transcendentals=0,
                                      bytes_accessed=int(e_bytes)),
    )(*edge_ops)

    # aggr='add' scatter as a segment sum on the XLA side (no dense one-hot S).
    h0 = jax.ops.segment_sum(msg_pad[:E], col_j, num_segments=n_nodes)
    h0_pad = jnp.pad(h0, ((0, N_pad - n_nodes), (0, 0)))

    # ---- kernel 2: all TAGConv layers, P resident in VMEM ----
    P_pad = jnp.pad(P_bf, ((0, N_pad - n_nodes), (0, N_pad - n_nodes)))

    wb_ops = []
    tag_flops = 0
    for i, (w, b) in enumerate(zip(params["conv_w"], params["conv_b"])):
        w = np.asarray(w, np.float32)                       # (K+1, H, dout)
        dout = w.shape[-1]
        dpad = OUT_PAD if i == n_layers - 1 else dout       # lane-dense final store only
        wpad = np.zeros((K + 1, H, dpad), np.float32)
        wpad[:, :, :dout] = w
        bpad = np.zeros((1, dpad), np.float32)
        bpad[:, :dout] = np.asarray(b, np.float32)
        wb_ops.append(jnp.asarray(wpad).astype(jnp.bfloat16))
        wb_ops.append(jnp.asarray(bpad))
        tag_flops += 2 * K * N_pad * N_pad * H + 2 * (K + 1) * N_pad * H * dpad

    tag_ops = (h0_pad, P_pad, *wb_ops)
    tag_bytes = (sum(int(a.size) * a.dtype.itemsize for a in tag_ops)
                 + N_pad * OUT_PAD * 4)

    kern = functools.partial(_tagconv_stack_kernel, K=K, n_layers=n_layers)
    out_pad = pl.pallas_call(
        kern,
        out_shape=jax.ShapeDtypeStruct((N_pad, OUT_PAD), jnp.float32),
        in_specs=_vmem_specs(len(tag_ops)),
        out_specs=pl.BlockSpec(memory_space=pltpu.MemorySpace.VMEM),
        compiler_params=pltpu.CompilerParams(vmem_limit_bytes=vmem_limit),
        cost_estimate=pl.CostEstimate(flops=int(tag_flops), transcendentals=0,
                                      bytes_accessed=int(tag_bytes)),
    )(*tag_ops)

    return out_pad[:n_nodes, :out_dim]


# --------------------------------- demo ---------------------------------

if __name__ == "__main__":
    nfeature_dim = 4
    efeature_dim = 2
    output_dim = 3
    hidden_dim = 32
    n_gnn_layers = 3
    K = 2
    num_nodes = 16

    key = jax.random.PRNGKey(0)
    k_params, k_x, k_ea = jax.random.split(key, 3)

    params = init_params(k_params, nfeature_dim, efeature_dim, hidden_dim,
                         output_dim, n_gnn_layers, K)

    # data.x : (num_nodes, 2*nfeature_dim + 4)
    data_x = jax.random.normal(k_x, (num_nodes, 2 * nfeature_dim + 4), jnp.float32)

    # directed edge list (ring + chords); undirect_graph will symmetrize it
    src = np.concatenate([np.arange(num_nodes), np.arange(8)])
    dst = np.concatenate([(np.arange(num_nodes) + 1) % num_nodes,
                          (np.arange(8) + 2) % num_nodes])
    edge_index = np.stack([src, dst], axis=0).astype(np.int32)     # (2, 24)
    edge_attr = jax.random.normal(k_ea, (edge_index.shape[1], efeature_dim),
                                  jnp.float32)

    out = mpn_forward(params, data_x, edge_index, np.asarray(edge_attr),
                      nf=nfeature_dim, K=K, use_pallas=True)
    out = jax.block_until_ready(out)

    ref = mpn_forward(params, data_x, edge_index, np.asarray(edge_attr),
                      nf=nfeature_dim, K=K, use_pallas=False)
    ref = jax.block_until_ready(ref)

    assert out.shape == (num_nodes, output_dim)
    # Both paths use bf16 operands + f32 accumulation, so they agree tightly;
    # tolerance covers op-ordering / padding differences.
    np.testing.assert_allclose(np.asarray(out), np.asarray(ref),
                               rtol=2e-2, atol=2e-2)
    print("KERNEL_OK")
</pallas_src>

<mosaic_0001>
module attributes {stable_mosaic.version = 11 : i64} {
  func.func @_edge_mlp_kernel(%arg0: memref<128x10xbf16, #tpu.memory_space<vmem>>, %arg1: memref<10x32xbf16, #tpu.memory_space<vmem>>, %arg2: memref<1x32xf32, #tpu.memory_space<vmem>>, %arg3: memref<32x32xbf16, #tpu.memory_space<vmem>>, %arg4: memref<1x32xf32, #tpu.memory_space<vmem>>, %arg5: memref<128x32xf32, #tpu.memory_space<vmem>>) attributes {dimension_semantics = [], scalar_prefetch = 0 : i64, scratch_operands = 0 : i64, tpu.core_type = #tpu.core_type<tc>} {
    %c0 = arith.constant 0 : index
    %c0_0 = arith.constant 0 : index
    %0 = vector.load %arg0[%c0, %c0_0] : memref<128x10xbf16, #tpu.memory_space<vmem>>, vector<128x10xbf16>
    %c0_1 = arith.constant 0 : index
    %c0_2 = arith.constant 0 : index
    %1 = vector.load %arg1[%c0_1, %c0_2] : memref<10x32xbf16, #tpu.memory_space<vmem>>, vector<10x32xbf16>
    %cst = arith.constant dense<0.000000e+00> : vector<128x32xf32>
    %2 = tpu.matmul %0, %1, %cst {dimension_numbers = #tpu.dot_dimension_numbers<[1], [0], [0], [1], [0, 0, 1, 1], [], []>} : vector<128x10xbf16>, vector<10x32xbf16>, vector<128x32xf32> -> vector<128x32xf32>
    %c0_3 = arith.constant 0 : index
    %c0_4 = arith.constant 0 : index
    %3 = vector.load %arg2[%c0_3, %c0_4] : memref<1x32xf32, #tpu.memory_space<vmem>>, vector<1x32xf32>
    %4 = vector.broadcast %3 : vector<1x32xf32> to vector<128x32xf32>
    %5 = arith.addf %2, %4 : vector<128x32xf32>
    %cst_5 = arith.constant 0.000000e+00 : f32
    %6 = vector.broadcast %cst_5 : f32 to vector<128x32xf32>
    %7 = arith.maximumf %5, %6 : vector<128x32xf32>
    %8 = arith.truncf %7 : vector<128x32xf32> to vector<128x32xbf16>
    %c0_6 = arith.constant 0 : index
    %c0_7 = arith.constant 0 : index
    %9 = vector.load %arg3[%c0_6, %c0_7] : memref<32x32xbf16, #tpu.memory_space<vmem>>, vector<32x32xbf16>
    %cst_8 = arith.constant dense<0.000000e+00> : vector<128x32xf32>
    %10 = tpu.matmul %8, %9, %cst_8 {dimension_numbers = #tpu.dot_dimension_numbers<[1], [0], [0], [1], [0, 0, 1, 1], [], []>} : vector<128x32xbf16>, vector<32x32xbf16>, vector<128x32xf32> -> vector<128x32xf32>
    %c0_9 = arith.constant 0 : index
    %c0_10 = arith.constant 0 : index
    %11 = vector.load %arg4[%c0_9, %c0_10] : memref<1x32xf32, #tpu.memory_space<vmem>>, vector<1x32xf32>
    %12 = vector.broadcast %11 : vector<1x32xf32> to vector<128x32xf32>
    %13 = arith.addf %10, %12 : vector<128x32xf32>
    %c0_11 = arith.constant 0 : index
    %c0_12 = arith.constant 0 : index
    %14 = vector.load %arg5[%c0_11, %c0_12] : memref<128x32xf32, #tpu.memory_space<vmem>>, vector<128x32xf32>
    tpu.vector_store %arg5[%c0_11, %c0_12], %13 {strides = array<i32>} : memref<128x32xf32, #tpu.memory_space<vmem>>, vector<128x32xf32>,
    return
  }
}

</mosaic_0001>

<bundles_post_ra>
// kernel: tpu_custom_call.1
= control target key start
LH: loop header
LB: loop body
LE: loop exit
PB: predicated region body
PF: predicated region fallthrough
CT: control target
= control target key end

     0   :  { %vm116_vm0 = vcmask 1044480   ;;  %vm91_vm1 = vcmask 80896   ;;  %vm264_vm2 = vcmask 261120   ;;  %s653_s1 = inlined_call_operand.vmem [shape: bf16[10,32], index: 1, kind: input, shape index: {}]   ;;  %s654_s0 = inlined_call_operand.vmem [shape: bf16[128,10], index: 0, kind: input, shape index: {}]   ;;  %s655_s3 = inlined_call_operand.vmem [shape: bf16[32,32], index: 3, kind: input, shape index: {}]   ;;  %s656_s2 = inlined_call_operand.vmem [shape: f32[1,32], index: 2, kind: input, shape index: {}]   ;;  %s657_s4 = inlined_call_operand.vmem [shape: f32[1,32], index: 4, kind: input, shape index: {}]   ;;  %s658_s5 = inlined_call_operand.vmem [shape: f32[128,32], index: 5, kind: output, shape index: {}]  }
   0x1   :  { %v493_v0 = vld [vmem:[%s653_s1] sm:$0x1f]   ;;  %v495_v3 = vld [vmem:[%s654_s0 + $0x8] sm:$0xff]   ;;  %v496_v4 = vld [vmem:[%s654_s0 + $0x10] sm:$0xff]  }
   0x2   :  { %v494_v1 = vld [vmem:[%s654_s0] sm:$0xff]   ;;  %492 = vmatprep.subr.msk.bf16.mxu0 %vm116_vm0, %v493_v0  ;;  %v118_v2 = vsel %vm116_vm0, %v493_v0, 0  ;;  %v497_v5 = vld [vmem:[%s654_s0 + $0x18] sm:$0xff]   ;;  %v499_v7 = vld [vmem:[%s654_s0 + $0x28] sm:$0xff]  }
   0x3   :  { %455 = vmatpush3.bf16.msra.mxu0 %v118_v2  ;;  %456 = vmatprep.mubr.msk.bf16.mxu0 %vm91_vm1, %v494_v1  ;;  %v498_v6 = vld [vmem:[%s654_s0 + $0x20] sm:$0xff]   ;;  %v500_v8 = vld [vmem:[%s654_s0 + $0x30] sm:$0xff]   ;;  %v501_v9 = vld [vmem:[%s654_s0 + $0x38] sm:$0xff]  }
   0x4   :  { %v502_v10 = vld [vmem:[%s655_s3 + $0x8] sm:$0xff]   ;;  %v503_v11 = vld [vmem:[%s655_s3] sm:$0xff]  }
   0x5   :  { %472 = vmatprep.subr.bf16.mxu1 %v502_v10  ;;  %v406_v14 = vld [vmem:[%s656_s2] ss:$0 sm:$0xff] }
   0x6   :  { %457 = vmatmul.mubr.msk.bf16.vlgmr.msra.gmra.mxu0 %vm91_vm1, %v495_v3  ;;  %473 = vmatpush3.bf16.msra.mxu1 %v502_v10 }
   0x7   :  { %460 = vmatprep.mubr.msk.bf16.mxu0 %vm91_vm1, %v496_v4  ;;  %474 = vmatprep.subr.bf16.mxu1 %v503_v11 }
   0xa   :  { %475 = vmatpush3.bf16.msra.mxu1 %v503_v11 }
   0xe   :  { %461 = vmatmul.mubr.msk.bf16.gmra.mxu0 %vm91_vm1, %v497_v5  ;;  %v424_v5 = vld [vmem:[%s657_s4] ss:$0 sm:$0xff] }
   0xf   :  { %464 = vmatprep.mubr.msk.bf16.mxu0 %vm91_vm1, %v498_v6 }
  0x16   :  { %465 = vmatmul.mubr.msk.bf16.gmra.mxu0 %vm91_vm1, %v499_v7 }
  0x17   :  { %468 = vmatprep.mubr.msk.bf16.mxu0 %vm91_vm1, %v500_v8 }
  0x1e   :  { %469 = vmatmul.mubr.msk.bf16.gmra.mxu0 %vm91_vm1, %v501_v9 }
  0xc6   :  { %v458_v12 = vpop.f32.mrf.mxu0 }
  0xc7   :  { %v163_v18 = vadd.f32 %v458_v12, %v406_v14 }
  0xc8   :  { %v154_v13 = vpop.f32.mrf.mxu0 }
  0xc9   :  { %v155_v16 = vadd.f32 %v406_v14, %v154_v13  ;;  %v219_v25 = vmax.f32 %v163_v18, 0.0 }
  0xca   :  { %v459_v15 = vpop.f32.mrf.mxu0 }
  0xcb   :  { %v166_v17 = vadd.f32 %v459_v15, %v406_v14  ;;  %v217_v23 = vmax.f32 %v155_v16, 0.0 }
  0xcc   :  { %v157_v19 = vpop.f32.mrf.mxu0 }
  0xcd   :  { %v158_v20 = vadd.f32 %v406_v14, %v157_v19  ;;  %v220_v21 = vmax.f32 %v166_v17, 0.0 }
  0xce   :  { %v462_v22 = vpop.f32.mrf.mxu0 }
  0xcf   :  { %v218_v24 = vmax.f32 %v158_v20, 0.0  ;;  %v234_v28 = vpack.c.bf16 %v220_v21, %v219_v25  ;;  %v179_v32 = vadd.f32 %v462_v22, %v406_v14 }
  0xd0   :  { %v170_v26 = vpop.f32.mrf.mxu0 }
  0xd1   :  { %v233_v27 = vpack.c.bf16 %v218_v24, %v217_v23  ;;  %v171_v30 = vadd.f32 %v406_v14, %v170_v26  ;;  %v223_v39 = vmax.f32 %v179_v32, 0.0 }
  0xd2   :  { %v463_v29 = vpop.f32.mrf.mxu0 }
  0xd3   :  { %v182_v31 = vadd.f32 %v463_v29, %v406_v14  ;;  %476 = vmatprep.mubr.msk.bf16.mxu1 %vm264_vm2, %v233_v27  ;;  %v221_v37 = vmax.f32 %v171_v30, 0.0 }
  0xd4   :  { %v173_v33 = vpop.f32.mrf.mxu0  ;;  %477 = vmatmul.mubr.msk.bf16.vlgmr.msra.gmra.mxu1 %vm264_vm2, %v234_v28 }
  0xd5   :  { %v174_v34 = vadd.f32 %v406_v14, %v173_v33  ;;  %v224_v35 = vmax.f32 %v182_v31, 0.0 }
  0xd6   :  { %v466_v36 = vpop.f32.mrf.mxu0 }
  0xd7   :  { %v222_v38 = vmax.f32 %v174_v34, 0.0  ;;  %v236_v42 = vpack.c.bf16 %v224_v35, %v223_v39  ;;  %v195_v46 = vadd.f32 %v466_v36, %v406_v14 }
  0xd8   :  { %v186_v40 = vpop.f32.mrf.mxu0 }
  0xd9   :  { %v235_v41 = vpack.c.bf16 %v222_v38, %v221_v37  ;;  %v187_v44 = vadd.f32 %v406_v14, %v186_v40  ;;  %v227_v53 = vmax.f32 %v195_v46, 0.0 }
  0xda   :  { %v467_v43 = vpop.f32.mrf.mxu0 }
  0xdb   :  { %v198_v45 = vadd.f32 %v467_v43, %v406_v14  ;;  %480 = vmatprep.mubr.msk.bf16.mxu1 %vm264_vm2, %v235_v41  ;;  %v225_v51 = vmax.f32 %v187_v44, 0.0 }
  0xdc   :  { %v189_v47 = vpop.f32.mrf.mxu0  ;;  %481 = vmatmul.mubr.msk.bf16.gmra.mxu1 %vm264_vm2, %v236_v42 }
  0xdd   :  { %v190_v48 = vadd.f32 %v406_v14, %v189_v47  ;;  %v228_v49 = vmax.f32 %v198_v45, 0.0 }
  0xde   :  { %v470_v50 = vpop.f32.mrf.mxu0 }
  0xdf   :  { %v226_v52 = vmax.f32 %v190_v48, 0.0  ;;  %v238_v56 = vpack.c.bf16 %v228_v49, %v227_v53  ;;  %v211_v60 = vadd.f32 %v470_v50, %v406_v14 }
  0xe0   :  { %v202_v54 = vpop.f32.mrf.mxu0 }
  0xe1   :  { %v237_v55 = vpack.c.bf16 %v226_v52, %v225_v51  ;;  %v203_v58 = vadd.f32 %v406_v14, %v202_v54  ;;  %v231_v2 = vmax.f32 %v211_v60, 0.0 }
  0xe2   :  { %v471_v57 = vpop.f32.mrf.mxu0 }
  0xe3   :  { %v214_v59 = vadd.f32 %v471_v57, %v406_v14  ;;  %484 = vmatprep.mubr.msk.bf16.mxu1 %vm264_vm2, %v237_v55  ;;  %v229_v0 = vmax.f32 %v203_v58, 0.0 }
  0xe4   :  { %v205_v61 = vpop.f32.mrf.mxu0  ;;  %485 = vmatmul.mubr.msk.bf16.gmra.mxu1 %vm264_vm2, %v238_v56 }
  0xe5   :  { %v206_v62 = vadd.f32 %v406_v14, %v205_v61  ;;  %v232_v63 = vmax.f32 %v214_v59, 0.0 }
  0xe7   :  { %v230_v1 = vmax.f32 %v206_v62, 0.0  ;;  %v240_v4 = vpack.c.bf16 %v232_v63, %v231_v2 }
  0xe9   :  { %v239_v3 = vpack.c.bf16 %v230_v1, %v229_v0 }
  0xeb   :  { %488 = vmatprep.mubr.msk.bf16.mxu1 %vm264_vm2, %v239_v3 }
  0xec   :  { %489 = vmatmul.mubr.msk.bf16.gmra.mxu1 %vm264_vm2, %v240_v4 }
 0x194   :  { %v478_v6 = vpop.f32.mrf.mxu1 }
 0x195   :  { %v332_v7 = vadd.f32 %v478_v6, %v424_v5 }
 0x196   :  { %v323_v8 = vpop.f32.mrf.mxu1 }
 0x197   :  { %388 = vst.msk [vmem:[%s658_s5 + $0x10] sm:$0xff] %vm264_vm2, %v332_v7  ;;  %v324_v9 = vadd.f32 %v424_v5, %v323_v8 }
 0x198   :  { %v479_v10 = vpop.f32.mrf.mxu1 }
 0x199   :  { %386 = vst.msk [vmem:[%s658_s5] sm:$0xff] %vm264_vm2, %v324_v9  ;;  %v335_v11 = vadd.f32 %v479_v10, %v424_v5 }
 0x19a   :  { %v326_v12 = vpop.f32.mrf.mxu1 }
 0x19b   :  { %389 = vst.msk [vmem:[%s658_s5 + $0x18] sm:$0xff] %vm264_vm2, %v335_v11  ;;  %v327_v13 = vadd.f32 %v424_v5, %v326_v12 }
 0x19c   :  { %v482_v14 = vpop.f32.mrf.mxu1 }
 0x19d   :  { %387 = vst.msk [vmem:[%s658_s5 + $0x8] sm:$0xff] %vm264_vm2, %v327_v13  ;;  %v348_v15 = vadd.f32 %v482_v14, %v424_v5 }
 0x19e   :  { %v339_v16 = vpop.f32.mrf.mxu1 }
 0x19f   :  { %392 = vst.msk [vmem:[%s658_s5 + $0x30] sm:$0xff] %vm264_vm2, %v348_v15  ;;  %v340_v17 = vadd.f32 %v424_v5, %v339_v16 }
 0x1a0   :  { %v483_v18 = vpop.f32.mrf.mxu1 }
 0x1a1   :  { %390 = vst.msk [vmem:[%s658_s5 + $0x20] sm:$0xff] %vm264_vm2, %v340_v17  ;;  %v351_v19 = vadd.f32 %v483_v18, %v424_v5 }
 0x1a2   :  { %v342_v20 = vpop.f32.mrf.mxu1 }
 0x1a3   :  { %393 = vst.msk [vmem:[%s658_s5 + $0x38] sm:$0xff] %vm264_vm2, %v351_v19  ;;  %v343_v21 = vadd.f32 %v424_v5, %v342_v20 }
 0x1a4   :  { %v486_v22 = vpop.f32.mrf.mxu1 }
 0x1a5   :  { %391 = vst.msk [vmem:[%s658_s5 + $0x28] sm:$0xff] %vm264_vm2, %v343_v21  ;;  %v364_v23 = vadd.f32 %v486_v22, %v424_v5 }
 0x1a6   :  { %v355_v24 = vpop.f32.mrf.mxu1 }
 0x1a7   :  { %396 = vst.msk [vmem:[%s658_s5 + $0x50] sm:$0xff] %vm264_vm2, %v364_v23  ;;  %v356_v25 = vadd.f32 %v424_v5, %v355_v24 }
 0x1a8   :  { %v487_v26 = vpop.f32.mrf.mxu1 }
 0x1a9   :  { %394 = vst.msk [vmem:[%s658_s5 + $0x40] sm:$0xff] %vm264_vm2, %v356_v25  ;;  %v367_v27 = vadd.f32 %v487_v26, %v424_v5 }
 0x1aa   :  { %v358_v28 = vpop.f32.mrf.mxu1 }
 0x1ab   :  { %397 = vst.msk [vmem:[%s658_s5 + $0x58] sm:$0xff] %vm264_vm2, %v367_v27  ;;  %v359_v29 = vadd.f32 %v424_v5, %v358_v28 }
 0x1ac   :  { %v490_v30 = vpop.f32.mrf.mxu1 }
 0x1ad   :  { %395 = vst.msk [vmem:[%s658_s5 + $0x48] sm:$0xff] %vm264_vm2, %v359_v29  ;;  %v380_v31 = vadd.f32 %v490_v30, %v424_v5 }
 0x1ae   :  { %v371_v32 = vpop.f32.mrf.mxu1 }
 0x1af   :  { %400 = vst.msk [vmem:[%s658_s5 + $0x70] sm:$0xff] %vm264_vm2, %v380_v31  ;;  %v372_v33 = vadd.f32 %v424_v5, %v371_v32 }
 0x1b0   :  { %v491_v34 = vpop.f32.mrf.mxu1 }
 0x1b1   :  { %398 = vst.msk [vmem:[%s658_s5 + $0x60] sm:$0xff] %vm264_vm2, %v372_v33  ;;  %v383_v35 = vadd.f32 %v491_v34, %v424_v5 }
 0x1b2   :  { %v374_v36 = vpop.f32.mrf.mxu1 }
 0x1b3   :  { %401 = vst.msk [vmem:[%s658_s5 + $0x78] sm:$0xff] %vm264_vm2, %v383_v35  ;;  %v375_v37 = vadd.f32 %v424_v5, %v374_v36 }
 0x1b5   :  { %399 = vst.msk [vmem:[%s658_s5 + $0x68] sm:$0xff] %vm264_vm2, %v375_v37 }

</bundles_post_ra>
